<compile_context>
chip_gen: v5e
topology: v5e:2x2
jax: 0.10.0
libtpu: 0.0.40
codegen_flags: <defaults>
</compile_context>

<pallas_src>
import jax
import jax.numpy as jnp
from jax.experimental import pallas as pl
from jax.experimental.pallas import tpu as pltpu

CURVATURE = 1.0                    # Poincare ball curvature c
SQRT_C = float(CURVATURE) ** 0.5
MIN_NORM = 1e-15                   # geoopt-style norm clamp
ARTANH_EPS = 1e-7                  # clamp artanh argument away from 1

TARGET_BLOCK_BYTES = 4 << 20       # ~4 MiB of input per grid step
VMEM_LIMIT_BYTES = 32 * 1024 * 1024


def _scale_from_sq(sq):
    """artanh(sqrt(c)*||y||) / (sqrt(c)*||y||) from the per-row sum of squares."""
    norm = jnp.maximum(jnp.sqrt(sq), MIN_NORM)
    denom = norm if SQRT_C == 1.0 else SQRT_C * norm
    # z = sqrt(c)*||y|| >= 0 always, so only the upper artanh clamp is needed.
    z = jnp.minimum(denom, 1.0 - ARTANH_EPS)
    artanh = 0.5 * jnp.log((1.0 + z) * pl.reciprocal(1.0 - z))
    return artanh * pl.reciprocal(denom)


def _packed_kernel(x_ref, b_ref, o_ref):
    """Lane-packed path (k = 128 // D logical rows per 128-lane slab).

    x_ref: (row_tile, k*D) block.  b_ref: (k*D, k*D) bf16 block-diagonal 0/1
    indicator (constant operand, resident in VMEM).  x2 @ B yields, in every
    lane, the sum of squares of its own D-lane segment, i.e. the per-row
    squared norm already broadcast to full lane width.
    """
    x = x_ref[...].astype(jnp.float32)
    x2 = x * x
    # Exact-enough bf16 hi/lo split of x^2 (relative error <= 2^-18): two
    # native 1-pass bf16 matmuls replace the ~6-pass f32 MXU emulation.
    x2_hi = x2.astype(jnp.bfloat16)
    x2_lo = (x2 - x2_hi.astype(jnp.float32)).astype(jnp.bfloat16)
    b = b_ref[...]
    sq = (jnp.dot(x2_hi, b, preferred_element_type=jnp.float32)
          + jnp.dot(x2_lo, b, preferred_element_type=jnp.float32))
    o_ref[...] = (_scale_from_sq(sq) * x).astype(o_ref.dtype)


def _rowwise_kernel(x_ref, o_ref):
    """Unpacked path (D >= 128 or D not a divisor of 128): plain lane reduce."""
    x = x_ref[...].astype(jnp.float32)
    sq = jnp.sum(x * x, axis=-1, keepdims=True)
    o_ref[...] = (_scale_from_sq(sq) * x).astype(o_ref.dtype)


def logmap0_pallas(x, *, target_block_bytes=TARGET_BLOCK_BYTES):
    """logmap0 over the last axis of x (any leading shape)."""
    orig_shape = x.shape
    orig_dtype = x.dtype
    D = orig_shape[-1]
    x2d = x.reshape(-1, D)
    R = x2d.shape[0]

    # Lane-dense packing factor: k logical rows per 128-lane slab.
    k = (128 // D) if (D < 128 and 128 % D == 0) else 1
    Dp = k * D

    itemsize = jnp.dtype(orig_dtype).itemsize
    # Minimum sublane tile for this dtype: 8 (f32) / 16 (bf16) / 32 (int8/fp8).
    sub = max(8, 32 // itemsize)

    Rp = pl.cdiv(R, k)                                   # packed rows needed
    row_bytes = Dp * itemsize
    desired = max(sub, (target_block_bytes // row_bytes) // sub * sub)
    row_tile = min(desired, pl.cdiv(Rp, sub) * sub)
    grid_rows = pl.cdiv(Rp, row_tile)
    if grid_rows == 1 and Rp > sub:
        # Split into (at least) two blocks so both v7x TensorCores get work.
        row_tile = pl.cdiv(pl.cdiv(Rp, 2), sub) * sub
        grid_rows = pl.cdiv(Rp, row_tile)
    Rp_total = grid_rows * row_tile
    R_total = Rp_total * k

    if R_total != R:
        # Zero-padded rows are harmless (clamped norm -> finite scale -> 0 out)
        # and are sliced off below.
        x2d = jnp.pad(x2d, ((0, R_total - R), (0, 0)))
    xp = x2d.reshape(Rp_total, Dp)
    # TODO(synk): for repeated large calls, keep activations in this packed
    # (Rp, 128) layout across the surrounding ops so the pad/repack reshape
    # does not add an extra HBM round trip per call.

    # Alias the packed input buffer with the output (same shape/dtype) only
    # when `xp` is provably a fresh buffer (repack or pad happened), so we
    # can never invalidate the caller's array in eager mode.
    aliases = {0: 0} if (k > 1 or R_total != R) else {}

    compiler_params = pltpu.CompilerParams(
        dimension_semantics=("parallel",),
        vmem_limit_bytes=VMEM_LIMIT_BYTES)

    if k > 1:
        # Block-diagonal 0/1 indicator B[l, l'] = 1 iff lanes l, l' belong to
        # the same D-lane segment.  Exactly representable in bf16; built once
        # here (hoisted out of the per-step kernel body) and kept resident via
        # a constant index_map.
        lane = jnp.arange(Dp, dtype=jnp.int32)
        bmat = (lane[:, None] // D == lane[None, :] // D).astype(jnp.bfloat16)

        out = pl.pallas_call(
            _packed_kernel,
            out_shape=jax.ShapeDtypeStruct((Rp_total, Dp), orig_dtype),
            grid=(grid_rows,),
            in_specs=[pl.BlockSpec((row_tile, Dp), lambda i: (i, 0)),
                      pl.BlockSpec((Dp, Dp), lambda i: (0, 0))],
            out_specs=pl.BlockSpec((row_tile, Dp), lambda i: (i, 0)),
            compiler_params=compiler_params,
            input_output_aliases=aliases,
            cost_estimate=pl.CostEstimate(
                flops=4 * Rp_total * Dp * Dp + 10 * Rp_total * Dp,
                transcendentals=4 * Rp_total * Dp,
                bytes_accessed=2 * Rp_total * Dp * itemsize + 2 * Dp * Dp),
        )(xp, bmat)
    else:
        out = pl.pallas_call(
            _rowwise_kernel,
            out_shape=jax.ShapeDtypeStruct((Rp_total, Dp), orig_dtype),
            grid=(grid_rows,),
            in_specs=[pl.BlockSpec((row_tile, Dp), lambda i: (i, 0))],
            out_specs=pl.BlockSpec((row_tile, Dp), lambda i: (i, 0)),
            compiler_params=compiler_params,
            input_output_aliases=aliases,
            cost_estimate=pl.CostEstimate(
                flops=10 * Rp_total * Dp,
                transcendentals=4 * Rp_total,
                bytes_accessed=2 * Rp_total * Dp * itemsize),
        )(xp)

    out = out.reshape(R_total, D)[:R]
    return out.reshape(orig_shape)


def logmap0_ref(x):
    x = x.astype(jnp.float32)
    sqrt_c = jnp.float32(CURVATURE) ** 0.5
    norm = jnp.maximum(
        jnp.sqrt(jnp.sum(x * x, axis=-1, keepdims=True)), MIN_NORM)
    z = jnp.clip(sqrt_c * norm, -1.0 + ARTANH_EPS, 1.0 - ARTANH_EPS)
    artanh = 0.5 * jnp.log((1.0 + z) / (1.0 - z))
    return artanh / (sqrt_c * norm) * x


if __name__ == "__main__":
    # Small deterministic input: (batch=2, channels=4, seq=16, hidden=32).
    # Scaled so per-row norms stay well inside the unit Poincare ball.
    key = jax.random.PRNGKey(0)
    x = 0.1 * jax.random.uniform(
        key, (2, 4, 16, 32), dtype=jnp.float32, minval=-1.0, maxval=1.0)

    y = jax.block_until_ready(logmap0_pallas(x))

    y_ref = logmap0_ref(x)
    assert y.shape == x.shape and y.dtype == x.dtype
    assert jnp.allclose(y, y_ref, atol=1e-5, rtol=1e-5), "mismatch vs reference"

    print("KERNEL_OK")
</pallas_src>

<mosaic_0001>
module attributes {stable_mosaic.version = 11 : i64} {
  func.func @_packed_kernel(%arg0: i32, %arg1: memref<16x128xf32, #tpu.memory_space<vmem>>, %arg2: memref<128x128xbf16, #tpu.memory_space<vmem>>, %arg3: memref<16x128xf32, #tpu.memory_space<vmem>>) attributes {dimension_semantics = [#tpu.dimension_semantics<parallel>], iteration_bounds = array<i64: 2>, scalar_prefetch = 0 : i64, scratch_operands = 0 : i64, tpu.core_type = #tpu.core_type<tc>, window_params = [{transform_indices = @transform_0, window_bounds = array<i64: 16, 128>}, {pipeline_mode = #tpu.pipeline_mode<synchronous>, transform_indices = @transform_1, window_bounds = array<i64: 128, 128>}, {transform_indices = @transform_2, window_bounds = array<i64: 16, 128>}]} {
    %c0 = arith.constant 0 : index
    %c0_0 = arith.constant 0 : index
    %0 = vector.load %arg1[%c0, %c0_0] : memref<16x128xf32, #tpu.memory_space<vmem>>, vector<16x128xf32>
    %1 = arith.mulf %0, %0 : vector<16x128xf32>
    %2 = arith.truncf %1 : vector<16x128xf32> to vector<16x128xbf16>
    %3 = arith.extf %2 : vector<16x128xbf16> to vector<16x128xf32>
    %4 = arith.subf %1, %3 : vector<16x128xf32>
    %5 = arith.truncf %4 : vector<16x128xf32> to vector<16x128xbf16>
    %c0_1 = arith.constant 0 : index
    %c0_2 = arith.constant 0 : index
    %6 = vector.load %arg2[%c0_1, %c0_2] : memref<128x128xbf16, #tpu.memory_space<vmem>>, vector<128x128xbf16>
    %cst = arith.constant dense<0.000000e+00> : vector<16x128xf32>
    %7 = tpu.matmul %2, %6, %cst {dimension_numbers = #tpu.dot_dimension_numbers<[1], [0], [0], [1], [0, 0, 1, 1], [], []>} : vector<16x128xbf16>, vector<128x128xbf16>, vector<16x128xf32> -> vector<16x128xf32>
    %cst_3 = arith.constant dense<0.000000e+00> : vector<16x128xf32>
    %8 = tpu.matmul %5, %6, %cst_3 {dimension_numbers = #tpu.dot_dimension_numbers<[1], [0], [0], [1], [0, 0, 1, 1], [], []>} : vector<16x128xbf16>, vector<128x128xbf16>, vector<16x128xf32> -> vector<16x128xf32>
    %9 = arith.addf %7, %8 : vector<16x128xf32>
    %10 = math.sqrt %9 : vector<16x128xf32>
    %cst_4 = arith.constant 1.000000e-15 : f32
    %11 = vector.broadcast %cst_4 : f32 to vector<16x128xf32>
    %12 = arith.maximumf %10, %11 : vector<16x128xf32>
    %cst_5 = arith.constant 0.99999988 : f32
    %13 = vector.broadcast %cst_5 : f32 to vector<16x128xf32>
    %14 = arith.minimumf %12, %13 : vector<16x128xf32>
    %cst_6 = arith.constant 1.000000e+00 : f32
    %15 = vector.broadcast %cst_6 : f32 to vector<16x128xf32>
    %16 = arith.addf %15, %14 : vector<16x128xf32>
    %cst_7 = arith.constant 1.000000e+00 : f32
    %17 = vector.broadcast %cst_7 : f32 to vector<16x128xf32>
    %18 = arith.subf %17, %14 : vector<16x128xf32>
    %19 = tpu.reciprocal %18 : vector<16x128xf32> -> vector<16x128xf32>
    %20 = arith.mulf %16, %19 : vector<16x128xf32>
    %21 = math.log %20 : vector<16x128xf32>
    %cst_8 = arith.constant 5.000000e-01 : f32
    %22 = vector.broadcast %cst_8 : f32 to vector<16x128xf32>
    %23 = arith.mulf %22, %21 : vector<16x128xf32>
    %24 = tpu.reciprocal %12 : vector<16x128xf32> -> vector<16x128xf32>
    %25 = arith.mulf %23, %24 : vector<16x128xf32>
    %26 = arith.mulf %25, %0 : vector<16x128xf32>
    %c0_9 = arith.constant 0 : index
    %c0_10 = arith.constant 0 : index
    %27 = vector.load %arg3[%c0_9, %c0_10] : memref<16x128xf32, #tpu.memory_space<vmem>>, vector<16x128xf32>
    tpu.vector_store %arg3[%c0_9, %c0_10], %26 {strides = array<i32>} : memref<16x128xf32, #tpu.memory_space<vmem>>, vector<16x128xf32>,
    return
  }
  func.func @transform_0(%arg0: i32) -> (i32, i32) {
    %c0_i32 = arith.constant 0 : i32
    %c0_i32_0 = arith.constant 0 : i32
    return %arg0, %c0_i32 : i32, i32
  }
  func.func @transform_1(%arg0: i32) -> (i32, i32) {
    %c0_i32 = arith.constant 0 : i32
    %c0_i32_0 = arith.constant 0 : i32
    %c0_i32_1 = arith.constant 0 : i32
    return %c0_i32, %c0_i32_0 : i32, i32
  }
  func.func @transform_2(%arg0: i32) -> (i32, i32) {
    %c0_i32 = arith.constant 0 : i32
    %c0_i32_0 = arith.constant 0 : i32
    return %arg0, %c0_i32 : i32, i32
  }
}

</mosaic_0001>

<bundles_post_ra>
// kernel: tpu_custom_call.1
= control target key start
LH: loop header
LB: loop body
LE: loop exit
PB: predicated region body
PF: predicated region fallthrough
CT: control target
= control target key end

     0   :  { %7 = vsyncpa [#allocation3], 0  ;;  %s886_s0 = inlined_call_operand.hbm [shape: f32[32,128], index: 0, kind: input, shape index: {}, may-alias: {0,2}]   ;;  %s887_s1 = inlined_call_operand.vmem [shape: bf16[128,128], index: 1, kind: input, shape index: {}]   ;;  %s888_s2 = inlined_call_operand.hbm [shape: f32[32,128], index: 2, kind: output, shape index: {}, may-alias: {0,2}]  }
   0x1   :  { %9 = vsyncpa [#allocation3 + $0x1], 0 }
   0x2   :  { %10 = vsyncpa [#allocation4], 0 }
   0x3   :  { %12 = vsyncpa [#allocation4 + $0x1], 0  ;;  %s705_s9 = smov 0   ;;  %s707_s10 = smov 0  }
   0x4   :  { %s709_s11 = smov 0   ;;  %s711_s12 = smov 0  }
   0x5 LB: > { %s726_s13 = sadd.s32 4294967295, %s684_s12   ;;  %s466_s14 = sadd.s32 4294967294, %s684_s12   ;;  %s684_s12 = sphi %s711_s12, %s898_s12   ;;  %s680_s11 = sphi %s709_s11, %s897_s11   ;;  %s676_s10 = sphi %s707_s10, %s896_s10   ;;  %s672_s9 = sphi %s705_s9, %s895_s9  }
   0x6   : > { %s730_s15 = sadd.s32 1, %s684_s12   ;;  %s25_s16 = sadd.s32 1, %s680_s11 }
   0x7   : > { %s22_s17 = ssub.s32 %s684_s12, %s730_s15  ;;  %p32_p0 = scmp.ne.s32.totalorder %s680_s11, %s676_s10 }
   0x8   : > { %p23_p1 = scmp.eq.s32.totalorder %s22_s17, 0  ;;  %p33_p2 = scmp.eq.s32.totalorder %s684_s12, 0 }
   0x9   : > { %p38_p3 = scmp.ne.s32.totalorder %s676_s10, %s672_s9  ;;  %p39_p4 = scmp.eq.s32.totalorder %s726_s13, 0 }
   0xa   : > { %s742_s18 = scalar_select %p23_p1, %s680_s11, %s25_s16  }
   0xb   : > { %p744_p5 = por %p33_p2, %p32_p0  ;;  %p748_p6 = por %p39_p4, %p38_p3 }
   0xc   : > { %p83_p7 = scmp.eq.s32.totalorder %s726_s13, 1  ;;  %p89_p8 = scmp.eq.s32.totalorder %s466_s14, 1 }
   0xd   : > { %p534_p10 = scmp.lt.s32.totalorder %s684_s12, 2  ;;  %s112_s23 = sand.u32 1, %s680_s11  }
   0xe   : > { %p755_p11 = por %p83_p7, %p32_p0  ;;  %p759_p12 = por %p89_p8, %p38_p3 }
   0xf   : > { %s512_s24 = sshll.u32 %s684_s12, 4  ;;  %s469_s25 = sshll.u32 %s112_s23, 4 }
  0x10   : > { %s121_s28 = scalar_lea.hbm %s886_s0, %s512_s24  ;;  %s116_s30 = scalar_lea.vmem [#allocation2], %s469_s25 }
  0x11   : > { %s122_s29 = sshll.u32 %s121_s28, 4  ;;  %s124_s3 = sshll.u32 %s116_s30, 4  ;;  %s123_s29 = int_to_ptr.hbm [resolvable:$true] %s122_s29  ;;  %s125_s3 = int_to_ptr.vmem [resolvable:$true] %s124_s3 }
  0x12   : > { %p770_p13 = pnand %p534_p10, %p744_p5  ;;  %p472_p0 = scmp.ge.s32.totalorder %s684_s12, 1 }
  0x13   : > { %p132_p1 = scmp.lt.s32.totalorder %s684_s12, 3  ;;  %s113_s5 = scalar_lea.sflag [#allocation3], %s112_s23 }
  0x14   : > { %s588_s6 = sshra.s32 %s123_s29, 4  ;;  %p592_p3 = pneg %p770_p13  ;;  %s589_s6 = int_to_ptr.hbm [resolvable:$true] %s588_s6 }
  0x15   : > { %s590_s7 = scalar_lea.hbm %s589_s6, 16  ;;  %s595_s16 = scalar_lea.hbm %s886_s0, 32 }
  0x16   : > { %p591_p2 = scmp.ne.s32.totalorder %s589_s6, %s590_s7  ;;  %p596_p5 = scmp.lt.s32.totalorder %s589_s6, %s886_s0 }
  0x17   : > { %p597_p8 = scmp.lt.s32.totalorder %s595_s16, %s590_s7 }
  0x18   : > { %p593_p4 = pnand %p592_p3, %p591_p2 }
  0x19   : > { %p598_p10 = por %p597_p8, %p596_p5 }
  0x1a   : > { %p594_p7 = pneg %p593_p4 }
  0x1c   : > { %p599_p9 = pnand %p598_p10, %p594_p7 }
  0x1e   : > { %602 = shalt.err (!%p599_p9)
}
  0x1f   : > { %s686_s23 = smov 128   ;;  %s687_s24 = smov 8  }
  0x20   : > { %529 = dma.hbm_to_vmem [thread:$0]  (!%p770_p13), %s123_s29, 256, %s125_s3, %s113_s5, %s686_s23, %s686_s23, %s687_s24  }
  0x21   : > { %p133_p2 = pnand %p472_p0, %p132_p1 }
  0x22   : > { %s791_s25 = sand.u32 (!%p133_p2), 1, %s676_s10  }
  0x23   : > { %136 = sbr.rel (%p133_p2) target bundleno = 274 (0x112), region = 28  ;;  %s473_s26 = sshll.u32 (!%p133_p2), %s791_s25, 4 }
  0x24   : > { %s139_s27 = scalar_lea.sflag (!%p133_p2), [#allocation3], %s791_s25  ;;  %s142_s28 = scalar_lea.vmem (!%p133_p2), [#allocation2], %s473_s26 }
  0x28   : > { %663 = dma.done.wait (%p748_p6), %s139_s27, 256  }
  0x29   : > { %665 = vsyncadd (%p748_p6), %s139_s27, 4294967040  ;;  %v520_v0 = vld [vmem:[%s887_s1 + $0x38] sm:$0xff]  ;;  %v519_v1 = vld [vmem:[%s887_s1 + $0x30] sm:$0xff]  ;;  %s163_s4 = scalar_lea.vmem [#allocation5], %s473_s26  ;;  %s378_s6 = scalar_lea.sflag [#allocation4], %s791_s25 }
  0x2a   : > { %241 = vmatpush.bf16.msra.mxu0 %v520_v0  ;;  %261 = vmatpush.bf16.msra.mxu1 %v520_v0  ;;  %v518_v2 = vld [vmem:[%s887_s1 + $0x28] sm:$0xff]  ;;  %v517_v3 = vld [vmem:[%s887_s1 + $0x20] sm:$0xff]  ;;  %v516_v8 = vld [vmem:[%s887_s1 + $0x18] sm:$0xff]  ;;  %s638_s14 = scalar_lea.hbm %s888_s2, 32 }
  0x2b   : > { %v813_v4 = vld [vmem:[%s142_s28] sm:$0xff]  ;;  %v815_v5 = vld [vmem:[%s142_s28 + $0x8] sm:$0xff]  ;;  %s521_s28 = sshll.u32 %s726_s13, 4  ;;  %s390_s13 = sshll.u32 %s163_s4, 4  ;;  %s391_s13 = int_to_ptr.vmem [resolvable:$true] %s390_s13 }
  0x2c   : > { %v168_v6 = vmul.f32 %v813_v4, %v813_v4  ;;  %v169_v7 = vmul.f32 %v815_v5, %v815_v5  ;;  %v515_v11 = vld [vmem:[%s887_s1 + $0x10] sm:$0xff]  ;;  %v514_v14 = vld [vmem:[%s887_s1 + $0x8] sm:$0xff]  ;;  %v513_v19 = vld [vmem:[%s887_s1] sm:$0xff]  ;;  %s389_s3 = scalar_lea.hbm %s888_s2, %s521_s28 }
  0x2d   : > { %s392_s5 = sshll.u32 %s389_s3, 4  ;;  %s393_s5 = int_to_ptr.hbm [resolvable:$true] %s392_s5 }
  0x2e   : > { %242 = vmatpush.bf16.msra.mxu0 %v519_v1  ;;  %262 = vmatpush.bf16.msra.mxu1 %v519_v1  ;;  %v170_v9 = vpack.c.bf16 %v168_v6, %v168_v6  ;;  %v171_v10 = vpack.c.bf16 %v169_v7, %v169_v7  ;;  %s632_s20 = sshra.s32 %s393_s5, 4  ;;  %s633_s20 = int_to_ptr.hbm [resolvable:$true] %s632_s20 }
  0x2f   : > { %s634_s7 = scalar_lea.hbm %s633_s20, 16  ;;  %p639_p0 = scmp.lt.s32.totalorder %s633_s20, %s888_s2 }
  0x30   : > { %v172_v12 = vunpack.c.l.bf16 %v170_v9  ;;  %v173_v13 = vunpack.c.l.bf16 %v171_v10  ;;  %v257_v17 = vunpack.c.l.b16 %v170_v9  ;;  %v258_v18 = vunpack.c.l.b16 %v171_v10  ;;  %p635_p6 = scmp.ne.s32.totalorder %s633_s20, %s634_s7  ;;  %p640_p1 = scmp.lt.s32.totalorder %s638_s14, %s634_s7 }
  0x32   : > { %243 = vmatpush.bf16.msra.mxu0 %v518_v2  ;;  %263 = vmatpush.bf16.msra.mxu1 %v518_v2  ;;  %v174_v15 = vsub.f32 %v168_v6, %v172_v12  ;;  %v175_v16 = vsub.f32 %v169_v7, %v173_v13  ;;  %v259_v21 = vpack.c.b16 %v258_v18, %v257_v17  ;;  %p636_p9 = pnand %p635_p6, %p755_p11  ;;  %p641_p3 = por %p640_p1, %p639_p0 }
  0x34   : > { %v176_v20 = vpack.c.bf16 %v175_v16, %v174_v15  ;;  %p637_p13 = pneg %p636_p9 }
  0x36   : > { %244 = vmatpush.bf16.msra.mxu0 %v517_v3  ;;  %264 = vmatpush.bf16.msra.mxu1 %v517_v3  ;;  %p642_p4 = pnand %p641_p3, %p637_p13 }
  0x3a   : > { %245 = vmatpush.bf16.msra.mxu0 %v516_v8  ;;  %265 = vmatpush.bf16.msra.mxu1 %v516_v8 }
  0x3e   : > { %246 = vmatpush.bf16.msra.mxu0 %v515_v11  ;;  %266 = vmatpush.bf16.msra.mxu1 %v515_v11 }
  0x42   : > { %247 = vmatpush.bf16.msra.mxu0 %v514_v14  ;;  %267 = vmatpush.bf16.msra.mxu1 %v514_v14 }
  0x46   : > { %248 = vmatpush.bf16.msra.mxu0 %v513_v19  ;;  %268 = vmatpush.bf16.msra.mxu1 %v513_v19 }
  0x49   : > { %249 = vmatmul.bf16.vlgmr.msra.gmra.mxu0 %v176_v20  ;;  %269 = vmatmul.bf16.vlgmr.msra.gmra.mxu1 %v259_v21 }
  0xc6   : > { %v250_v22 = vpop.f32.mrf.mxu0  ;;  %v270_v23 = vpop.f32.mrf.mxu1 }
  0xc7   : > { %v271_v24 = vadd.f32 %v270_v23, %v250_v22 }
  0xc9   : > { %572 = vrsqrt.f32 %v271_v24  ;;  %vm282_vm0 = vcmp.eq.f32.partialorder %v271_v24, inf  ;;  %v285_v38 = vand.u32 2147483648, %v271_v24  ;;  %vm284_vm1 = vcmp.eq.f32.partialorder %v271_v24, 0.0 }
  0xce   : > { %v252_v25 = vpop.f32.mrf.mxu0  ;;  %v272_v26 = vpop.f32.mrf.mxu1 }
  0xcf   : > { %v573_v27 = vpop.eup %572  ;;  %v273_v28 = vadd.f32 %v272_v26, %v252_v25 }
  0xd0   : > { %v276_v29 = vmul.f32 %v573_v27, %v271_v24 }
  0xd1   : > { %574 = vrsqrt.f32 %v273_v28  ;;  %vm294_vm2 = vcmp.eq.f32.partialorder %v273_v28, inf  ;;  %v297_v48 = vand.u32 2147483648, %v273_v28  ;;  %vm296_vm3 = vcmp.eq.f32.partialorder %v273_v28, 0.0 }
  0xd2   : > { %v277_v30 = vmul.f32 %v573_v27, %v276_v29 }
  0xd4   : > { %v278_v31 = vmul.f32 0.5, %v277_v30 }
  0xd6   : > { %v279_v32 = vsub.f32 1.5, %v278_v31 }
  0xd7   : > { %v575_v33 = vpop.eup %574 }
  0xd8   : > { %v280_v34 = vmul.f32 %v573_v27, %v279_v32  ;;  %v288_v35 = vmul.f32 %v575_v33, %v273_v28 }
  0xda   : > { %v281_v36 = vmul.f32 %v280_v34, %v271_v24  ;;  %v289_v37 = vmul.f32 %v575_v33, %v288_v35 }
  0xdc   : > { %v283_v39 = vsel %vm282_vm0, %v271_v24, %v281_v36  ;;  %v290_v40 = vmul.f32 0.5, %v289_v37 }
  0xdd   : > { %v286_v41 = vsel %vm284_vm1, %v285_v38, %v283_v39 }
  0xde   : > { %v833_v42 = vmax.f32 %v286_v41, 1e-15  ;;  %v291_v43 = vsub.f32 1.5, %v290_v40 }
  0xe0   : > { %v292_v44 = vmul.f32 %v575_v33, %v291_v43  ;;  %v301_v45 = vmin.f32 %v833_v42, 0.9999999  ;;  %v354_v22 = vand.u32 2147483648, %v833_v42  ;;  %vm348_vm13 = vweird.f32 %v833_v42 }
  0xe1   : > { %v352_v24 = vand.u32 2147483647, %v833_v42 }
  0xe2   : > { %v293_v46 = vmul.f32 %v292_v44, %v273_v28  ;;  %v305_v47 = vsub.f32 1.0, %v301_v45  ;;  %v303_v3 = vadd.f32 1.0, %v301_v45  ;;  %v355_v30 = vor.u32 1.1754944e-38, %v354_v22 }
  0xe3   : > { %vm353_vm15 = vcmp.eq.f32.partialorder %v352_v24, 8.507059e+37 }
  0xe4   : > { %v295_v49 = vsel %vm294_vm2, %v273_v28, %v293_v46  ;;  %576 = vrcp.f32 %v305_v47  ;;  %v318_v58 = vand.u32 2147483648, %v305_v47  ;;  %v316_v61 = vand.u32 2147483647, %v305_v47 }
  0xe5   : > { %578 = vrcp.f32 %v833_v42  ;;  %v298_v50 = vsel %vm296_vm3, %v297_v48, %v295_v49  ;;  %vm312_vm5 = vweird.f32 %v305_v47 }
  0xe6   : > { %v837_v51 = vmax.f32 %v298_v50, 1e-15  ;;  %v319_v0 = vor.u32 1.1754944e-38, %v318_v58  ;;  %vm317_vm7 = vcmp.eq.f32.partialorder %v316_v61, 8.507059e+37 }
  0xe8   : > { %v302_v52 = vmin.f32 %v837_v51, 0.9999999  ;;  %v368_v35 = vand.u32 2147483648, %v837_v51  ;;  %vm362_vm1 = vweird.f32 %v837_v51  ;;  %v366_v36 = vand.u32 2147483647, %v837_v51 }
  0xea   : > { %v577_v53 = vpop.eup %576  ;;  %v306_v54 = vsub.f32 1.0, %v302_v52  ;;  %v304_v20 = vadd.f32 1.0, %v302_v52  ;;  %v369_v41 = vor.u32 1.1754944e-38, %v368_v35  ;;  %vm367_vm3 = vcmp.eq.f32.partialorder %v366_v36, 8.507059e+37 }
  0xeb   : > { %v579_v55 = vpop.eup %578  ;;  %v308_v56 = vmul.f32 %v577_v53, %v305_v47  ;;  %vm313_vm4 = vweird.f32 %v577_v53 }
  0xec   : > { %580 = vrcp.f32 %v306_v54  ;;  %v344_v59 = vmul.f32 %v579_v55, %v833_v42  ;;  %vm314_vm6 = vmor %vm312_vm5, %vm313_vm4  ;;  %v332_v11 = vand.u32 2147483648, %v306_v54  ;;  %v330_v15 = vand.u32 2147483647, %v306_v54 }
  0xed   : > { %582 = vrcp.f32 %v837_v51  ;;  %v309_v57 = vsub.f32 1.0, %v308_v56  ;;  %vm326_vm9 = vweird.f32 %v306_v54  ;;  %vm349_vm11 = vweird.f32 %v579_v55 }
  0xee   : > { %v345_v1 = vsub.f32 1.0, %v344_v59  ;;  %v333_v17 = vor.u32 1.1754944e-38, %v332_v11  ;;  %vm331_vm12 = vcmp.eq.f32.partialorder %v330_v15, 8.507059e+37  ;;  %vm350_vm14 = vmor %vm348_vm13, %vm349_vm11 }
  0xef   : > { %v310_v60 = vmul.f32 %v577_v53, %v309_v57 }
  0xf0   : > { %v346_v12 = vmul.f32 %v579_v55, %v345_v1 }
  0xf1   : > { %v311_v62 = vadd.f32 %v577_v53, %v310_v60 }
  0xf2   : > { %v581_v63 = vpop.eup %580  ;;  %v347_v18 = vadd.f32 %v579_v55, %v346_v12 }
  0xf3   : > { %v583_v2 = vpop.eup %582  ;;  %v315_v6 = vsel %vm314_vm6, %v577_v53, %v311_v62  ;;  %v322_v7 = vmul.f32 %v581_v63, %v306_v54  ;;  %vm327_vm8 = vweird.f32 %v581_v63 }
  0xf4   : > { %v320_v8 = vsel %vm317_vm7, %v319_v0, %v315_v6  ;;  %v358_v13 = vmul.f32 %v583_v2, %v837_v51  ;;  %vm328_vm10 = vmor %vm326_vm9, %vm327_vm8  ;;  %v351_v28 = vsel %vm350_vm14, %v579_v55, %v347_v18  ;;  %vm363_vm0 = vweird.f32 %v583_v2 }
  0xf5   : > { %v323_v9 = vsub.f32 1.0, %v322_v7  ;;  %v335_v10 = vmul.f32 %v320_v8, %v303_v3  ;;  %v356_v32 = vsel %vm353_vm15, %v355_v30, %v351_v28  ;;  %vm364_vm2 = vmor %vm362_vm1, %vm363_vm0 }
  0xf6   : > { %v359_v19 = vsub.f32 1.0, %v358_v13 }
  0xf7   : > { %v324_v14 = vmul.f32 %v581_v63, %v323_v9  ;;  %584 = vlog2.f32 %v335_v10 }
  0xf8   : > { %v360_v29 = vmul.f32 %v583_v2, %v359_v19 }
  0xf9   : > { %v325_v16 = vadd.f32 %v581_v63, %v324_v14 }
  0xfa   : > { %v361_v33 = vadd.f32 %v583_v2, %v360_v29 }
  0xfb   : > { %v329_v21 = vsel %vm328_vm10, %v581_v63, %v325_v16 }
  0xfc   : > { %v334_v23 = vsel %vm331_vm12, %v333_v17, %v329_v21  ;;  %v365_v40 = vsel %vm364_vm2, %v583_v2, %v361_v33 }
  0xfd   : > { %v585_v25 = vpop.eup %584  ;;  %v336_v26 = vmul.f32 %v334_v23, %v304_v20  ;;  %v370_v43 = vsel %vm367_vm3, %v369_v41, %v365_v40 }
  0xfe   : > { %v338_v27 = vmul.f32 0.6931472, %v585_v25 }
  0xff   : > { %586 = vlog2.f32 %v336_v26 }
 0x100   : > { %v341_v31 = vmul.f32 0.5, %v338_v27 }
 0x102   : > { %v371_v34 = vmul.f32 %v356_v32, %v341_v31 }
 0x104   : > { %v373_v37 = vmul.f32 %v371_v34, %v813_v4 }
 0x105   : > { %v587_v38 = vpop.eup %586 }
 0x106   : > { %v340_v39 = vmul.f32 0.6931472, %v587_v38  ;;  %375 = vst [vmem:[%s163_s4] sm:$0xff] %v373_v37 }
 0x108   : > { %v342_v42 = vmul.f32 0.5, %v340_v39 }
 0x10a   : > { %v372_v4 = vmul.f32 %v370_v43, %v342_v42 }
 0x10c   : > { %v374_v44 = vmul.f32 %v372_v4, %v815_v5 }
 0x10e   : > { %376 = vst [vmem:[%s163_s4 + $0x8] sm:$0xff] %v374_v44 }
 0x10f   : > { %645 = shalt.err (!%p642_p4)
}
 0x110   : > { %s688_s25 = smov 128   ;;  %s689_s19 = smov 8  }
 0x111   : > { %524 = dma.vmem_to_hbm [thread:$0]  (%p755_p11), %s391_s13, 256, %s393_s5, %s378_s6, %s688_s25, %s688_s25, %s689_s19  }
 0x112 PF: > { %s407_s23 = sand.u32 1, %s672_s9   ;;  %p894_p7 = scmp.ge.s32.totalorder %s684_s12, 2 }
 0x113   : > { %s408_s24 = scalar_lea.sflag [#allocation4], %s407_s23 }
 0x114   : > { %p531_p5 = pnand %p894_p7, %p759_p12 }
 0x116   : > { %p532_p8 = pneg %p531_p5 }
 0x118   : > { %667 = dma.done.wait (%p532_p8), %s408_s24, 256  }
 0x119   : > { %669 = vsyncadd (%p532_p8), %s408_s24, 4294967040  ;;  %p15_p10 = scmp.ge.s32.totalorder %s730_s15, 4   ;;  %s895_s9 = smov %s676_s10 }
 0x11a   : > { %s896_s10 = smov %s680_s11  ;;  %s897_s11 = smov %s742_s18 }
 0x11b   : > { %s898_s12 = smov %s730_s15  ;;  %17 = sbr.rel (!%p15_p10) target bundleno = 5 (0x5), region = 73 }
 0x120   :  { %414 = vsyncpa [#allocation3], 1 }
 0x121   :  { %416 = vsyncpa [#allocation3 + $0x1], 1 }
 0x122   :  { %417 = vsyncpa [#allocation4], 1 }
 0x123   :  { %419 = vsyncpa [#allocation4 + $0x1], 1 }

</bundles_post_ra>
